<compile_context>
chip_gen: v7x
topology: tpu7x:2x2x1
jax: 0.10.0
libtpu: 0.0.40
codegen_flags: <defaults>
</compile_context>

<pallas_src>
import jax
import jax.numpy as jnp
import numpy as np
from jax.experimental import pallas as pl
from jax.experimental.pallas import tpu as pltpu


# --------------------------------------------------------------------------
# Module port: exact semantics of the reference (no params, forward -> None).
# Intentionally contains no Pallas / device work (perf-review item #1).
# --------------------------------------------------------------------------
class SemanticSegmentationHead:
    """JAX port of the (empty) PyTorch SemanticSegmentationHead."""

    def __init__(self) -> None:
        # Reference __init__ only calls super(); nothing to initialize.
        pass

    def forward(self):
        # Reference forward body is `pass` -> returns None.  Zero device time.
        return None

    def __call__(self):
        return self.forward()


# --------------------------------------------------------------------------
# Smoke-test-only Pallas kernel (kept out of the model path).
# Pure HBM->HBM DMA copy: no VMEM blocks, no vreg traffic, no grid.
# --------------------------------------------------------------------------
def _hbm_copy_kernel(x_hbm_ref, o_hbm_ref, sem):
    # One DMA descriptor moves the whole (tiny) array HBM -> HBM.
    cp = pltpu.make_async_copy(x_hbm_ref, o_hbm_ref, sem)
    cp.start()
    cp.wait()


@jax.jit
def hbm_copy_pallas(x2d: jax.Array) -> jax.Array:
    """Single-DMA identity copy; both operands stay in HBM (pl.ANY)."""
    return pl.pallas_call(
        _hbm_copy_kernel,
        out_shape=jax.ShapeDtypeStruct(x2d.shape, x2d.dtype),
        in_specs=[pl.BlockSpec(memory_space=pl.ANY)],
        out_specs=pl.BlockSpec(memory_space=pl.ANY),
        scratch_shapes=[pltpu.SemaphoreType.DMA],
    )(x2d)


if __name__ == "__main__":
    # Deterministic small example input consistent with an NCHW feature map.
    key = jax.random.PRNGKey(0)
    x = jax.random.normal(key, (2, 4, 16, 16), dtype=jnp.float32)  # NCHW

    # 1) Exercise the module exactly as PyTorch would: forward() -> None,
    #    and crucially it launches no device work.
    head = SemanticSegmentationHead()
    result = head()
    assert result is None, "forward() must return None to match the reference"

    # 2) Plumbing smoke test only: run the HBM->HBM DMA kernel once.
    n, c, h, w = x.shape
    total = n * c * h * w                       # 2048 elements
    x2d = x.reshape(total // 128, 128)          # (16, 128): lane-dense slab
    x_host = np.asarray(x)
    x2d_host = np.asarray(x2d)

    y2d = jax.block_until_ready(hbm_copy_pallas(x2d))
    y2d_host = np.asarray(y2d)

    # Sanity: the DMA copy must reproduce its input bit-exactly.
    assert np.array_equal(y2d_host, x2d_host), "HBM copy Pallas kernel mismatch"
    y_host = y2d_host.reshape(n, c, h, w)
    assert np.array_equal(y_host, x_host), "reshape round-trip mismatch"

    print("KERNEL_OK")
</pallas_src>

<mosaic_0001>
module attributes {stable_mosaic.version = 11 : i64} {
  func.func @_hbm_copy_kernel(%arg0: memref<16x128xf32, #tpu.memory_space<any>>, %arg1: memref<16x128xf32, #tpu.memory_space<any>>, %arg2: memref<!tpu.dma_semaphore, #tpu.memory_space<semaphore_mem>>) attributes {dimension_semantics = [], scalar_prefetch = 0 : i64, scratch_operands = 1 : i64, tpu.core_type = #tpu.core_type<tc>} {
    tpu.enqueue_dma source(%arg0 : memref<16x128xf32, #tpu.memory_space<any>>) target(%arg1 : memref<16x128xf32, #tpu.memory_space<any>>) target_semaphore(%arg2 : memref<!tpu.dma_semaphore, #tpu.memory_space<semaphore_mem>>)
    tpu.wait_dma2 semaphore(%arg2 : memref<!tpu.dma_semaphore, #tpu.memory_space<semaphore_mem>>) src(%arg0 : memref<16x128xf32, #tpu.memory_space<any>>) dst(%arg1 : memref<16x128xf32, #tpu.memory_space<any>>)
    return
  }
}

</mosaic_0001>

<bundles_post_ra>
// kernel: hbm_copy_pallas.1
= control target key start
LH: loop header
LB: loop body
LE: loop exit
PB: predicated region body
PF: predicated region fallthrough
CT: control target
= control target key end

     0   :  { %s34_s6 = smov [#allocation2]   ;;  %s35_s7 = smov [#allocation3]   ;;  %s53_s0 = inlined_call_operand.hbm [shape: f32[16,128], index: 0, kind: input, shape index: {}]   ;;  %s54_s1 = inlined_call_operand.hbm [shape: f32[16,128], index: 1, kind: output, shape index: {}]  }
   0x1   :  { %s36_s8 = smov 0  }
   0x2   :  { %18 = dma.general %s53_s0, 256, %s54_s1, %s34_s6, %s35_s7, [#allocation4], %s36_s8, 0  }
   0x3   :  { %32 = dma.done.wait [#allocation2], 256 }
   0x4   :  { %33 = vsyncadd [#allocation2], 4294967040 }
   0x5   :  { %22 = vsyncmov [#allocation2] }
   0x8   :  { %s23_s13 = vpop.sfrf %22 }
   0x9   :  { %p28_p0 = scmp.ne.s32.totalorder %s23_s13, 0 }
   0xb   :  { %27 = shalt.err (%p28_p0)  }

</bundles_post_ra>
